<compile_context>
chip_gen: v7x
topology: tpu7x:2x2x1
jax: 0.10.0
libtpu: 0.0.40
codegen_flags: <defaults>
</compile_context>

<pallas_src>
import functools

import jax
import jax.numpy as jnp
from jax.experimental import pallas as pl
from jax.experimental.pallas import tpu as pltpu


# --------------------------------------------------------------------------
# Kernel
# --------------------------------------------------------------------------
def _cosine_logits_kernel(x_ref, wt_ref, o_ref):
    # x_ref : (tile_b, D)      input batch tile
    # wt_ref: (D, tile_n)      pre-transposed weight tile (MXU-native layout)
    # o_ref : (tile_b, tile_n) output logits tile (lane-dense stores)
    xf = x_ref[...].astype(jnp.float32)
    sq_norm = jnp.sum(xf * xf, axis=-1, keepdims=True)           # (tile_b, 1)
    # max(sqrt(s), 1e-12) == sqrt(max(s, 1e-24)); rsqrt runs on the EUP.
    inv_norm = jax.lax.rsqrt(jnp.maximum(sq_norm, 1e-24))

    # Feed raw x straight to the MXU; scale the f32 accumulator afterwards.
    acc = jnp.dot(x_ref[...], wt_ref[...], preferred_element_type=jnp.float32)
    o_ref[...] = (acc * inv_norm).astype(o_ref.dtype)


# --------------------------------------------------------------------------
# Tile / VMEM heuristics
# --------------------------------------------------------------------------
def _pick_tile(dim, cap, align):
    """Largest divisor of `dim` that is <= cap and either a multiple of
    `align` or equal to dim itself (full-extent blocks are always legal)."""
    cap = max(1, min(cap, dim))
    for d in range(cap, 0, -1):
        if dim % d == 0 and (d % align == 0 or d == dim):
            return d
    return dim


def _vmem_budget_bytes():
    try:
        cap = int(pltpu.get_tpu_info().vmem_capacity_bytes)
    except Exception:
        cap = 64 << 20  # conservative: v7x per-TensorCore VMEM
    return (cap * 3) // 4  # ~25% headroom


def _default_tiles(B, D, N, x_item, w_item, o_item, budget):
    # Grow tile_b to the whole batch when the x tile is small so the weight is
    # streamed from HBM exactly once; otherwise pick a divisor of B.
    if B * D * x_item <= budget // 4:
        tile_b = B
    else:
        tile_b = _pick_tile(B, max(8, (budget // 4) // (D * x_item)), 8)

    # Large tile_n amortizes the ~0.35us per-grid-step overhead, but keep the
    # weight double-buffers <= ~1/3 of the VMEM budget (matters on v7x).
    tile_n = _pick_tile(N, 2048, 128)
    while tile_n > 128:
        w_buf = 2 * D * tile_n * w_item
        total = 2 * tile_b * D * x_item + w_buf + 2 * tile_b * tile_n * o_item
        if w_buf <= budget // 3 and total <= budget:
            break
        new_tn = _pick_tile(N, tile_n // 2, 128)
        if new_tn >= tile_n:
            break
        tile_n = new_tn
    return tile_b, tile_n


# --------------------------------------------------------------------------
# Forward
# --------------------------------------------------------------------------
@functools.partial(jax.jit, static_argnames=("tile_b", "tile_n", "out_dtype"))
def cross_entropy_forward(x, weight_t, *, tile_b=None, tile_n=None,
                          out_dtype=None):
    """x: (B, D), weight_t: (D, N) pre-transposed weight  ->  (B, N) logits.

    Equivalent to F.linear(F.normalize(x, p=2, dim=1), weight_t.T).
    """
    B, D = x.shape
    D2, N = weight_t.shape
    assert D == D2, "in_features mismatch (did you pass weight instead of weight.T?)"
    if out_dtype is None:
        out_dtype = x.dtype

    x_item = jnp.dtype(x.dtype).itemsize
    w_item = jnp.dtype(weight_t.dtype).itemsize
    o_item = jnp.dtype(out_dtype).itemsize
    budget = _vmem_budget_bytes()

    auto_b, auto_n = _default_tiles(B, D, N, x_item, w_item, o_item, budget)
    if tile_b is None:
        tile_b = auto_b
    if tile_n is None:
        tile_n = auto_n
    assert B % tile_b == 0, "batch must divide by tile_b"
    assert N % tile_n == 0, "out_features must divide by tile_n"

    # Double-buffered x / W / out tiles.
    vmem_est = (2 * tile_b * D * x_item
                + 2 * D * tile_n * w_item
                + 2 * tile_b * tile_n * o_item)
    vmem_limit = int(min(max(2 * vmem_est, 32 << 20), budget))

    grid = (B // tile_b, N // tile_n)
    return pl.pallas_call(
        _cosine_logits_kernel,
        out_shape=jax.ShapeDtypeStruct((B, N), out_dtype),
        grid_spec=pltpu.PrefetchScalarGridSpec(
            num_scalar_prefetch=0,
            grid=grid,
            in_specs=[
                pl.BlockSpec((tile_b, D), lambda b, n: (b, 0)),   # x batch tile
                pl.BlockSpec((D, tile_n), lambda b, n: (0, n)),   # W^T class tile
            ],
            out_specs=pl.BlockSpec((tile_b, tile_n), lambda b, n: (b, n)),
        ),
        compiler_params=pltpu.CompilerParams(
            # No cross-step state: both axes are independent, so v7x can shard
            # either axis across its two TensorCores.
            dimension_semantics=("parallel", "parallel"),
            vmem_limit_bytes=vmem_limit,
        ),
    )(x, weight_t)


# --------------------------------------------------------------------------
# Parameter init (matches nn.init.xavier_uniform_ on a (N, D) weight)
# --------------------------------------------------------------------------
def xavier_uniform(key, out_features, in_features, dtype=jnp.float32):
    bound = (6.0 / (in_features + out_features)) ** 0.5
    return jax.random.uniform(
        key, (out_features, in_features), dtype=dtype, minval=-bound, maxval=bound
    )


def cross_entropy_init(key, in_features, out_features, dtype=jnp.float32):
    """Returns the (D, N) pre-transposed parameter used by the forward.

    Transposing ONCE here (outside the jitted forward) avoids re-materializing
    a (N, D)->(D, N) HBM transpose on every call.  Pass dtype=jnp.bfloat16 to
    halve the weight HBM stream in the mem-bound regime (accumulation stays
    f32 inside the kernel).
    """
    w = xavier_uniform(key, out_features, in_features, dtype=dtype)  # (N, D)
    return jnp.asarray(w.T)                                          # (D, N)


# --------------------------------------------------------------------------
# Demo / correctness check
# --------------------------------------------------------------------------
if __name__ == "__main__":
    in_features = 128     # D (lane-aligned)
    out_features = 256    # N (lane-aligned)
    batch = 16            # B (sublane-aligned)

    key = jax.random.PRNGKey(0)
    kx, kw = jax.random.split(key)

    x = jax.random.normal(kx, (batch, in_features), dtype=jnp.float32)
    weight = xavier_uniform(kw, out_features, in_features)   # (N, D) PyTorch layout
    weight_t = jnp.asarray(weight.T)                          # persisted (D, N) param

    out = cross_entropy_forward(x, weight_t)
    out = jax.block_until_ready(out)

    # Pure-JAX reference (same semantics as the PyTorch forward).
    norm = jnp.maximum(jnp.linalg.norm(x, axis=1, keepdims=True), 1e-12)
    ref = (x / norm) @ weight.T
    assert out.shape == (batch, out_features)
    assert jnp.allclose(out, ref, atol=2e-4, rtol=2e-4), "mismatch vs reference"

    print("KERNEL_OK")
</pallas_src>

<mosaic_0001>
module attributes {stable_mosaic.version = 11 : i64} {
  func.func @_cosine_logits_kernel(%arg0: i32, %arg1: i32, %arg2: memref<16x128xf32, #tpu.memory_space<vmem>>, %arg3: memref<128x256xf32, #tpu.memory_space<vmem>>, %arg4: memref<16x256xf32, #tpu.memory_space<vmem>>) attributes {dimension_semantics = [#tpu.dimension_semantics<parallel>, #tpu.dimension_semantics<parallel>], iteration_bounds = array<i64: 1, 1>, scalar_prefetch = 0 : i64, scratch_operands = 0 : i64, tpu.core_type = #tpu.core_type<tc>, window_params = [{transform_indices = @transform_0, window_bounds = array<i64: 16, 128>}, {transform_indices = @transform_1, window_bounds = array<i64: 128, 256>}, {transform_indices = @transform_2, window_bounds = array<i64: 16, 256>}]} {
    %c0 = arith.constant 0 : index
    %c0_0 = arith.constant 0 : index
    %0 = vector.load %arg2[%c0, %c0_0] : memref<16x128xf32, #tpu.memory_space<vmem>>, vector<16x128xf32>
    %1 = arith.mulf %0, %0 : vector<16x128xf32>
    %cst = arith.constant dense<0.000000e+00> : vector<16xf32>
    %2 = vector.multi_reduction <add>, %1, %cst [1] : vector<16x128xf32> to vector<16xf32>
    %3 = vector.shape_cast %2 : vector<16xf32> to vector<16x1xf32>
    %cst_1 = arith.constant 1.000000e-24 : f32
    %4 = vector.broadcast %cst_1 : f32 to vector<16x1xf32>
    %5 = arith.maximumf %3, %4 : vector<16x1xf32>
    %6 = math.rsqrt %5 : vector<16x1xf32>
    %c0_2 = arith.constant 0 : index
    %c0_3 = arith.constant 0 : index
    %7 = vector.load %arg2[%c0_2, %c0_3] : memref<16x128xf32, #tpu.memory_space<vmem>>, vector<16x128xf32>
    %c0_4 = arith.constant 0 : index
    %c0_5 = arith.constant 0 : index
    %8 = vector.load %arg3[%c0_4, %c0_5] : memref<128x256xf32, #tpu.memory_space<vmem>>, vector<128x256xf32>
    %cst_6 = arith.constant dense<0.000000e+00> : vector<16x256xf32>
    %9 = tpu.matmul %7, %8, %cst_6 {dimension_numbers = #tpu.dot_dimension_numbers<[1], [0], [0], [1], [0, 0, 1, 1], [], []>} : vector<16x128xf32>, vector<128x256xf32>, vector<16x256xf32> -> vector<16x256xf32>
    %10 = vector.broadcast %6 : vector<16x1xf32> to vector<16x256xf32>
    %11 = arith.mulf %9, %10 : vector<16x256xf32>
    %c0_7 = arith.constant 0 : index
    %c0_8 = arith.constant 0 : index
    %12 = vector.load %arg4[%c0_7, %c0_8] : memref<16x256xf32, #tpu.memory_space<vmem>>, vector<16x256xf32>
    tpu.vector_store %arg4[%c0_7, %c0_8], %11 {strides = array<i32>} : memref<16x256xf32, #tpu.memory_space<vmem>>, vector<16x256xf32>,
    return
  }
  func.func @transform_0(%arg0: i32, %arg1: i32) -> (i32, i32) {
    %c0_i32 = arith.constant 0 : i32
    %c0_i32_0 = arith.constant 0 : i32
    return %arg0, %c0_i32 : i32, i32
  }
  func.func @transform_1(%arg0: i32, %arg1: i32) -> (i32, i32) {
    %c0_i32 = arith.constant 0 : i32
    %c0_i32_0 = arith.constant 0 : i32
    return %c0_i32, %arg1 : i32, i32
  }
  func.func @transform_2(%arg0: i32, %arg1: i32) -> (i32, i32) {
    %c0_i32 = arith.constant 0 : i32
    return %arg0, %arg1 : i32, i32
  }
}

</mosaic_0001>

<bundles_post_ra>
// kernel: cross_entropy_forward.1
= control target key start
LH: loop header
LB: loop body
LE: loop exit
PB: predicated region body
PF: predicated region fallthrough
CT: control target
= control target key end

     0   :  { %7 = vsyncpa [#allocation3], 0  ;;  %s384_s0 = inlined_call_operand.hbm [shape: f32[16,128], index: 0, kind: input, shape index: {}]   ;;  %s385_s1 = inlined_call_operand.hbm [shape: f32[128,256], index: 1, kind: input, shape index: {}]   ;;  %s386_s2 = inlined_call_operand.hbm [shape: f32[16,256], index: 2, kind: output, shape index: {}]  }
   0x1   :  { %8 = vsyncpa [#allocation6], 0 }
   0x2   :  { %9 = vsyncpa [#allocation4], 0  ;;  %s319_s9 = smov [#allocation2]   ;;  %s247_s13 = scalar_lea.hbm %s384_s0, 256 }
   0x3   :  { %s15_s10 = sshll.u32 %s319_s9, 4  ;;  %p248_p0 = scmp.ne.s32.totalorder %s384_s0, %s247_s13  ;;  %s16_s10 = int_to_ptr.vmem [resolvable:$true] %s15_s10 }
   0x4   :  { %p251_p1 = scmp.lt.u32.totalorder %s247_s13, %s384_s0 }
   0x6   :  { %p253_p2 = pnand %p251_p1, %p248_p0 }
   0x8   :  { %256 = shalt.err (!%p253_p2)
}
   0x9   :  { %s257_s18 = scalar_lea.vmem %s16_s10, 256  ;;  %p262_p4 = scmp.lt.s32.totalorder %s16_s10, %s16_s10 }
   0xa   :  { %p258_p3 = scmp.ne.s32.totalorder %s16_s10, %s257_s18  ;;  %p263_p5 = scmp.lt.s32.totalorder %s257_s18, %s257_s18 }
   0xc   :  { %p264_p6 = por %p263_p5, %p262_p4 }
   0xe   :  { %p265_p7 = pnand %p264_p6, %p258_p3 }
  0x10   :  { %268 = shalt.err (!%p265_p7)
}
  0x11   :  { %s320_s19 = smov 128   ;;  %s321_s20 = smov 8  }
  0x12   :  { %21 = dma.hbm_to_vmem [thread:$0]  %s384_s0, 256, %s16_s10, [#allocation3], %s320_s19, %s320_s19, %s321_s20  }
  0x13   :  { %s322_s23 = smov [#allocation5]   ;;  %s269_s27 = scalar_lea.hbm %s385_s1, 4096 }
  0x14   :  { %s27_s24 = sshll.u32 %s322_s23, 4  ;;  %p270_p8 = scmp.ne.s32.totalorder %s385_s1, %s269_s27  ;;  %s28_s24 = int_to_ptr.vmem [resolvable:$true] %s27_s24 }
  0x15   :  { %p273_p9 = scmp.lt.u32.totalorder %s269_s27, %s385_s1 }
  0x17   :  { %p275_p10 = pnand %p273_p9, %p270_p8 }
  0x19   :  { %278 = shalt.err (!%p275_p10)
}
  0x1a   :  { %s279_s4 = scalar_lea.vmem %s28_s24, 4096  ;;  %p284_p12 = scmp.lt.s32.totalorder %s28_s24, %s28_s24 }
  0x1b   :  { %p280_p11 = scmp.ne.s32.totalorder %s28_s24, %s279_s4  ;;  %p285_p13 = scmp.lt.s32.totalorder %s279_s4, %s279_s4 }
  0x1d   :  { %p286_p0 = por %p285_p13, %p284_p12 }
  0x1f   :  { %p287_p1 = pnand %p286_p0, %p280_p11 }
  0x21   :  { %290 = shalt.err (!%p287_p1)
}
  0x22   :  { %s323_s0 = smov 256   ;;  %s324_s5 = smov 16  }
  0x23   :  { %33 = dma.hbm_to_vmem [thread:$0]  %s385_s1, 4096, %s28_s24, [#allocation6], %s323_s0, %s323_s0, %s324_s5  }
  0x24   :  { %313 = dma.done.wait [#allocation3], 256  }
  0x25   :  { %314 = vsyncadd [#allocation3], 4294967040 }
  0x26   :  { %315 = dma.done.wait [#allocation6], 4096  }
  0x27   :  { %316 = vsyncadd [#allocation6], 4294963200  ;;  %v325_v0 = vmov 0.0   ;;  %v53_v1 = vld [vmem:[#allocation5 + $0x8] sm:$0xff]  ;;  %v55_v2 = vld [vmem:[#allocation5 + $0x18] sm:$0xff]  ;;  %s326_s1 = smov [#allocation7]  }
  0x28   :  { %148 = vmatprep.mubr.f32.mxu0 %v325_v0  ;;  %154 = vmatprep.mubr.f32.mxu1 %v325_v0  ;;  %v52_v3 = vld [vmem:[#allocation5] sm:$0xff]  ;;  %v187_v4 = vpack.c.bf16 %v55_v2, %v53_v1  ;;  %v54_v5 = vld [vmem:[#allocation5 + $0x10] sm:$0xff]  ;;  %v57_v6 = vld [vmem:[#allocation5 + $0x28] sm:$0xff]  ;;  %s174_s8 = sshll.u32 %s326_s1, 4  ;;  %s175_s8 = int_to_ptr.vmem [resolvable:$true] %s174_s8 }
  0x29   :  { %v59_v7 = vld [vmem:[#allocation5 + $0x38] sm:$0xff]  ;;  %v189_v8 = vpack.c.bf16 %v54_v5, %v52_v3  ;;  %v56_v10 = vld [vmem:[#allocation5 + $0x20] sm:$0xff]  ;;  %v58_v11 = vld [vmem:[#allocation5 + $0x30] sm:$0xff]  ;;  %s291_s9 = scalar_lea.vmem %s175_s8, 512  ;;  %p296_p3 = scmp.lt.s32.totalorder %s175_s8, %s175_s8 }
  0x2a   :  { %v191_v9 = vpack.c.bf16 %v59_v7, %v57_v6  ;;  %v61_v12 = vld [vmem:[#allocation5 + $0x48] sm:$0xff]  ;;  %188 = vmatprep.subr.bf16.mxu0 %v187_v4  ;;  %219 = vmatprep.subr.bf16.mxu1 %v187_v4  ;;  %v63_v13 = vld [vmem:[#allocation5 + $0x58] sm:$0xff]  ;;  %v193_v14 = vpack.c.bf16 %v58_v11, %v56_v10  ;;  %v60_v16 = vld [vmem:[#allocation5 + $0x40] sm:$0xff]  ;;  %p292_p2 = scmp.ne.s32.totalorder %s175_s8, %s291_s9  ;;  %p297_p4 = scmp.lt.s32.totalorder %s291_s9, %s291_s9 }
  0x2b   :  { %190 = vmatpush1.bf16.msra.mxu0 %v189_v8  ;;  %227 = vmatpush1.bf16.msra.mxu1 %v189_v8  ;;  %v195_v15 = vpack.c.bf16 %v63_v13, %v61_v12  ;;  %v62_v17 = vld [vmem:[#allocation5 + $0x50] sm:$0xff]  ;;  %v65_v18 = vld [vmem:[#allocation5 + $0x68] sm:$0xff]  ;;  %v67_v19 = vld [vmem:[#allocation5 + $0x78] sm:$0xff] }
  0x2c   :  { %192 = vmatprep.subr.bf16.mxu0 %v191_v9  ;;  %220 = vmatprep.subr.bf16.mxu1 %v191_v9  ;;  %v197_v20 = vpack.c.bf16 %v62_v17, %v60_v16  ;;  %v199_v21 = vpack.c.bf16 %v67_v19, %v65_v18  ;;  %v64_v22 = vld [vmem:[#allocation5 + $0x60] sm:$0xff]  ;;  %v66_v23 = vld [vmem:[#allocation5 + $0x70] sm:$0xff]  ;;  %v69_v24 = vld [vmem:[#allocation5 + $0x88] sm:$0xff]  ;;  %p298_p5 = por %p297_p4, %p296_p3 }
  0x2d   :  { %v71_v25 = vld [vmem:[#allocation5 + $0x98] sm:$0xff]  ;;  %v40_v26 = vld [vmem:[#allocation2] sm:$0xff]  ;;  %v201_v28 = vpack.c.bf16 %v66_v23, %v64_v22  ;;  %v68_v30 = vld [vmem:[#allocation5 + $0x80] sm:$0xff] }
  0x2e   :  { %v42_v27 = vmul.f32 %v40_v26, %v40_v26  ;;  %v203_v29 = vpack.c.bf16 %v71_v25, %v69_v24  ;;  %v70_v31 = vld [vmem:[#allocation5 + $0x90] sm:$0xff]  ;;  %v41_v32 = vld [vmem:[#allocation2 + $0x8] sm:$0xff]  ;;  %v73_v33 = vld [vmem:[#allocation5 + $0xa8] sm:$0xff]  ;;  %p299_p6 = pnand %p298_p5, %p292_p2 }
  0x2f   :  { %194 = vmatpush1.bf16.msra.mxu0 %v193_v14  ;;  %228 = vmatpush1.bf16.msra.mxu1 %v193_v14  ;;  %v75_v34 = vld [vmem:[#allocation5 + $0xb8] sm:$0xff]  ;;  %v43_v35 = vmul.f32 %v41_v32, %v41_v32  ;;  %v205_v36 = vpack.c.bf16 %v70_v31, %v68_v30  ;;  %v72_v38 = vld [vmem:[#allocation5 + $0xa0] sm:$0xff]  ;;  %v74_v39 = vld [vmem:[#allocation5 + $0xb0] sm:$0xff] }
  0x30   :  { %196 = vmatprep.subr.bf16.mxu0 %v195_v15  ;;  %221 = vmatprep.subr.bf16.mxu1 %v195_v15  ;;  %v207_v37 = vpack.c.bf16 %v75_v34, %v73_v33  ;;  %v77_v40 = vld [vmem:[#allocation5 + $0xc8] sm:$0xff]  ;;  %v79_v41 = vld [vmem:[#allocation5 + $0xd8] sm:$0xff]  ;;  %v209_v42 = vpack.c.bf16 %v74_v39, %v72_v38  ;;  %v76_v44 = vld [vmem:[#allocation5 + $0xc0] sm:$0xff] }
  0x31   :  { %44 = vadd.xlane.f32.xlu0 %v42_v27  ;;  %v211_v43 = vpack.c.bf16 %v79_v41, %v77_v40  ;;  %v78_v45 = vld [vmem:[#allocation5 + $0xd0] sm:$0xff]  ;;  %v81_v46 = vld [vmem:[#allocation5 + $0xe8] sm:$0xff]  ;;  %v83_v47 = vld [vmem:[#allocation5 + $0xf8] sm:$0xff] }
  0x32   :  { %v213_v48 = vpack.c.bf16 %v78_v45, %v76_v44  ;;  %v215_v49 = vpack.c.bf16 %v83_v47, %v81_v46  ;;  %v80_v50 = vld [vmem:[#allocation5 + $0xe0] sm:$0xff]  ;;  %v82_v51 = vld [vmem:[#allocation5 + $0xf0] sm:$0xff] }
  0x33   :  { %198 = vmatpush1.bf16.msra.mxu0 %v197_v20  ;;  %229 = vmatpush1.bf16.msra.mxu1 %v197_v20  ;;  %v217_v52 = vpack.c.bf16 %v82_v51, %v80_v50 }
  0x34   :  { %200 = vmatprep.subr.bf16.mxu0 %v199_v21  ;;  %222 = vmatprep.subr.bf16.mxu1 %v199_v21 }
  0x35   :  { %46 = vadd.xlane.f32.xlu0 %v43_v35 }
  0x37   :  { %202 = vmatpush1.bf16.msra.mxu0 %v201_v28  ;;  %230 = vmatpush1.bf16.msra.mxu1 %v201_v28 }
  0x38   :  { %204 = vmatprep.subr.bf16.mxu0 %v203_v29  ;;  %223 = vmatprep.subr.bf16.mxu1 %v203_v29 }
  0x3b   :  { %206 = vmatpush1.bf16.msra.mxu0 %v205_v36  ;;  %231 = vmatpush1.bf16.msra.mxu1 %v205_v36 }
  0x3c   :  { %208 = vmatprep.subr.bf16.mxu0 %v207_v37  ;;  %224 = vmatprep.subr.bf16.mxu1 %v207_v37 }
  0x3f   :  { %210 = vmatpush1.bf16.msra.mxu0 %v209_v42  ;;  %232 = vmatpush1.bf16.msra.mxu1 %v209_v42 }
  0x40   :  { %212 = vmatprep.subr.bf16.mxu0 %v211_v43  ;;  %225 = vmatprep.subr.bf16.mxu1 %v211_v43 }
  0x43   :  { %214 = vmatpush1.bf16.msra.mxu0 %v213_v48  ;;  %233 = vmatpush1.bf16.msra.mxu1 %v213_v48 }
  0x44   :  { %216 = vmatprep.subr.bf16.mxu0 %v215_v49  ;;  %226 = vmatprep.subr.bf16.mxu1 %v215_v49 }
  0x47   :  { %218 = vmatpush1.bf16.msra.mxu0 %v217_v52  ;;  %234 = vmatpush1.bf16.msra.mxu1 %v217_v52 }
  0x4a   :  { %149 = vmatmul.mubr.f32.vlgmr.msra.gmra.mrb[0].mxu0 %v40_v26  ;;  %155 = vmatmul.mubr.f32.vlgmr.msra.gmra.mrb[0].mxu1 %v41_v32 }
  0xbe   :  { %v45_v53 = vpop.xlane.xlu0 %44 }
  0xbf   :  { %v48_v56 = vmax.f32 %v45_v53, 1e-24 }
  0xc2   :  { %v47_v54 = vpop.xlane.xlu0 %46 }
  0xc3   :  { %v49_v55 = vmax.f32 %v47_v54, 1e-24 }
  0xc5   :  { %243 = vrsqrt.f32 %v49_v55 }
  0xc6   :  { %245 = vrsqrt.f32 %v48_v56 }
  0xcf   :  { %v244_v57 = vpop.eup %243 }
  0xd0   :  { %v246_v58 = vpop.eup %245 }
 0x11d   :  { %v150_v59 = vpop.f32.mrb[0].mxu0  ;;  %v156_v60 = vpop.f32.mrb[0].mxu1 }
 0x11e   :  { %v161_v61 = vmul.f32 %v246_v58, %v150_v59  ;;  %v163_v62 = vmul.f32 %v244_v57, %v156_v60  ;;  %v152_v63 = vpop.f32.mrb[1].mxu0  ;;  %v158_v0 = vpop.f32.mrb[1].mxu1 }
 0x11f   :  { %v162_v1 = vmul.f32 %v246_v58, %v152_v63  ;;  %v164_v2 = vmul.f32 %v244_v57, %v158_v0 }
 0x120   :  { %165 = vst [vmem:[#allocation7] sm:$0xff] %v161_v61  ;;  %167 = vst [vmem:[#allocation7 + $0x10] sm:$0xff] %v163_v62 }
 0x121   :  { %166 = vst [vmem:[#allocation7 + $0x8] sm:$0xff] %v162_v1  ;;  %168 = vst [vmem:[#allocation7 + $0x18] sm:$0xff] %v164_v2 }
 0x122   :  { %302 = shalt.err (!%p299_p6)
}
 0x123   :  { %s303_s12 = scalar_lea.hbm %s386_s2, 512 }
 0x124   :  { %p304_p7 = scmp.ne.s32.totalorder %s386_s2, %s303_s12  ;;  %p307_p8 = scmp.lt.u32.totalorder %s303_s12, %s386_s2 }
 0x126   :  { %p309_p9 = pnand %p307_p8, %p304_p7 }
 0x128   :  { %312 = shalt.err (!%p309_p9)
}
 0x129   :  { %180 = dma.vmem_to_hbm [thread:$0]  %s175_s8, 512, %s386_s2, [#allocation4], %s323_s0, %s323_s0, %s324_s5  }
 0x12a   :  { %317 = dma.done.wait [#allocation4], 512  }
 0x12b   :  { %318 = vsyncadd [#allocation4], 4294966784 }
 0x12c   :  { %184 = vsyncpa [#allocation3], 1 }
 0x12d   :  { %185 = vsyncpa [#allocation6], 1 }
 0x12e   :  { %186 = vsyncpa [#allocation4], 1 }

</bundles_post_ra>
